<compile_context>
chip_gen: v7x
topology: tpu7x:2x2x1
jax: 0.10.0
libtpu: 0.0.40
codegen_flags: <defaults>
</compile_context>

<pallas_src>
import jax
import jax.numpy as jnp
from jax import lax
from jax.experimental import pallas as pl
from jax.experimental.pallas import tpu as pltpu


def _vmem_budget_bytes():
    """Usable per-TensorCore VMEM budget, leaving headroom for Mosaic scratch."""
    phys = 64 << 20  # conservative fallback = v7x per-TC physical VMEM
    try:
        phys = int(pltpu.get_tpu_info().vmem_capacity_bytes)
    except Exception:
        pass
    # v5e/v6e (128 MiB physical) -> 96 MiB usable; v7x (64 MiB) -> 48 MiB usable.
    return min(phys * 3 // 4, phys - (16 << 20))


def _footprint_bytes(gb, NP, NPP, K, E, out_bytes):
    """VMEM bytes for one grid step under the default double-buffered pipeline."""
    return (2 * gb * NP * K * 2            # patches block, bf16, x2 buffers
            + 2 * gb * NPP * E * out_bytes  # output block, x2 buffers
            + 2 * K * E * 2                 # weight, bf16, x2 buffers (constant index map)
            + 2 * NPP * E * 4)              # cls/pos additive terms, f32, x2 buffers


def _pick_batch_group(B, NP, NPP, K, E, out_bytes, budget_bytes):
    """Largest divisor of B that fits the VMEM budget while keeping >= ~4 grid
    steps (>= 2 steps per TensorCore on 2-TC chips; keeps the pipeline busy)."""
    max_gb = max(1, B // 4)
    best = 1
    for gb in range(1, B + 1):
        if gb > max_gb:
            break
        if B % gb:
            continue
        if _footprint_bytes(gb, NP, NPP, K, E, out_bytes) <= budget_bytes:
            best = gb
    return best


def patch_embedding(x, conv_w, conv_b, cls_token, pos_emb, patch_size):
    """x: (B, C, H, W). Returns (B, num_patches + 1, embed_dim), same dtype as x."""
    B, C, H, W = x.shape
    p = patch_size
    Hp, Wp = H // p, W // p
    NP = Hp * Wp
    NPP = NP + 1
    E = conv_w.shape[0]
    K = C * p * p
    out_dtype = x.dtype
    out_bytes = jnp.dtype(out_dtype).itemsize

    # --- glue: patchify in bf16 (convert fuses into the transpose copy).
    # Ordering (c, ph, pw) matches the Conv2d weight flattening; sequence index
    # hp*Wp + wp matches Flatten(2). No zero-row pad / concat any more.
    xb = x.astype(jnp.bfloat16)
    patches = xb.reshape(B, C, Hp, p, Wp, p).transpose(0, 2, 4, 1, 3, 5).reshape(B, NP, K)

    w_flat = conv_w.reshape(E, K).T.astype(jnp.bfloat16)                 # (K, E) bf16
    pos2d = pos_emb.reshape(NPP, E).astype(jnp.float32)
    add_cls = cls_token.reshape(1, E).astype(jnp.float32) + pos2d[0:1]   # (1,  E) f32
    add_patch = conv_b.reshape(1, E).astype(jnp.float32) + pos2d[1:]     # (NP, E) f32

    budget = _vmem_budget_bytes()
    GB = _pick_batch_group(B, NP, NPP, K, E, out_bytes, budget)
    grid = (B // GB,)

    footprint = _footprint_bytes(GB, NP, NPP, K, E, out_bytes)
    vmem_limit = int(min(budget, max(16 << 20, footprint + (2 << 20))))

    def kernel(p_ref, w_ref, cls_ref, pos_ref, o_ref):
        # p_ref: (GB, NP, K) bf16 | w_ref: (K, E) bf16
        # cls_ref: (1, E) f32 = cls_token + pos[0]
        # pos_ref: (NP, E) f32 = conv_b + pos[1:]
        # o_ref: (GB, NPP, E) out_dtype
        def body(b, carry):
            y = jnp.dot(p_ref[b], w_ref[...],
                        preferred_element_type=jnp.float32)             # (NP, E) f32
            o_ref[b, pl.ds(1, NP), :] = (y + pos_ref[...]).astype(o_ref.dtype)
            o_ref[b, pl.ds(0, 1), :] = cls_ref[...].astype(o_ref.dtype)
            return carry

        # Fully unroll only when small; a rolled loop bounds vreg live ranges
        # once GB grows under the larger VMEM budget.
        lax.fori_loop(0, GB, body, None, unroll=(GB <= 8))

    out = pl.pallas_call(
        kernel,
        out_shape=jax.ShapeDtypeStruct((B, NPP, E), out_dtype),
        grid_spec=pltpu.PrefetchScalarGridSpec(
            num_scalar_prefetch=0,
            grid=grid,
            in_specs=[
                pl.BlockSpec((GB, NP, K), lambda g: (g, 0, 0)),
                pl.BlockSpec((K, E), lambda g: (0, 0)),
                pl.BlockSpec((1, E), lambda g: (0, 0)),
                pl.BlockSpec((NP, E), lambda g: (0, 0)),
            ],
            out_specs=pl.BlockSpec((GB, NPP, E), lambda g: (g, 0, 0)),
        ),
        compiler_params=pltpu.CompilerParams(
            dimension_semantics=("parallel",),
            vmem_limit_bytes=vmem_limit),
    )(patches, w_flat, add_cls, add_patch)

    # TODO(synk): nn.Dropout is identity in eval mode; training-mode stochastic
    # dropout (pltpu.prng_*) is intentionally omitted.
    return out


def _reference(x, conv_w, conv_b, cls_token, pos_emb, patch_size):
    # Pure-JAX reference mirroring the kernel's bf16-operand / f32-accumulate matmul.
    B, C, H, W = x.shape
    p = patch_size
    Hp, Wp = H // p, W // p
    NP = Hp * Wp
    E = conv_w.shape[0]
    patches = x.reshape(B, C, Hp, p, Wp, p).transpose(0, 2, 4, 1, 3, 5).reshape(B, NP, -1)
    patches = patches.astype(jnp.bfloat16).astype(jnp.float32)
    w = conv_w.reshape(E, -1).T.astype(jnp.bfloat16).astype(jnp.float32)
    y = patches @ w + conv_b.astype(jnp.float32)                         # (B, NP, E)
    cls = jnp.broadcast_to(cls_token.reshape(1, 1, E), (B, 1, E)).astype(jnp.float32)
    y = jnp.concatenate([cls, y], axis=1) + pos_emb.reshape(1, NP + 1, E)
    return y


if __name__ == "__main__":
    key = jax.random.PRNGKey(0)
    B, C, HW = 2, 4, 16
    patch_size = 8
    embed_dim = 32
    num_patches = (HW // patch_size) ** 2                                # 4

    k1, k2, k3, k4, k5 = jax.random.split(key, 5)
    x = jax.random.normal(k1, (B, C, HW, HW), dtype=jnp.float32)
    conv_w = jax.random.normal(k2, (embed_dim, C, patch_size, patch_size), jnp.float32) * 0.05
    conv_b = jax.random.normal(k3, (embed_dim,), jnp.float32) * 0.05
    cls_token = jax.random.normal(k4, (1, 1, embed_dim), jnp.float32)
    pos_emb = jax.random.normal(k5, (1, num_patches + 1, embed_dim), jnp.float32)

    out = patch_embedding(x, conv_w, conv_b, cls_token, pos_emb, patch_size)
    out = jax.block_until_ready(out)

    ref = _reference(x, conv_w, conv_b, cls_token, pos_emb, patch_size)
    assert out.shape == (B, num_patches + 1, embed_dim)
    assert jnp.allclose(out, ref, atol=1e-3, rtol=1e-3), float(jnp.max(jnp.abs(out - ref)))

    print("KERNEL_OK")
</pallas_src>

<mosaic_0001>
module attributes {stable_mosaic.version = 11 : i64} {
  func.func @kernel(%arg0: i32, %arg1: memref<1x4x256xbf16, #tpu.memory_space<vmem>>, %arg2: memref<256x32xbf16, #tpu.memory_space<vmem>>, %arg3: memref<1x32xf32, #tpu.memory_space<vmem>>, %arg4: memref<4x32xf32, #tpu.memory_space<vmem>>, %arg5: memref<1x5x32xf32, #tpu.memory_space<vmem>>) attributes {dimension_semantics = [#tpu.dimension_semantics<parallel>], iteration_bounds = array<i64: 2>, scalar_prefetch = 0 : i64, scratch_operands = 0 : i64, tpu.core_type = #tpu.core_type<tc>, window_params = [{transform_indices = @transform_0, window_bounds = array<i64: 1, 4, 256>}, {pipeline_mode = #tpu.pipeline_mode<synchronous>, transform_indices = @transform_1, window_bounds = array<i64: 256, 32>}, {pipeline_mode = #tpu.pipeline_mode<synchronous>, transform_indices = @transform_2, window_bounds = array<i64: 1, 32>}, {pipeline_mode = #tpu.pipeline_mode<synchronous>, transform_indices = @transform_3, window_bounds = array<i64: 4, 32>}, {transform_indices = @transform_4, window_bounds = array<i64: 1, 5, 32>}]} {
    %c0_i32 = arith.constant 0 : i32
    %0 = arith.index_cast %c0_i32 : i32 to index
    %c0 = arith.constant 0 : index
    %c0_0 = arith.constant 0 : index
    %1 = vector.load %arg1[%0, %c0, %c0_0] : memref<1x4x256xbf16, #tpu.memory_space<vmem>>, vector<1x4x256xbf16>
    %2 = vector.shape_cast %1 : vector<1x4x256xbf16> to vector<4x256xbf16>
    %c0_1 = arith.constant 0 : index
    %c0_2 = arith.constant 0 : index
    %3 = vector.load %arg2[%c0_1, %c0_2] : memref<256x32xbf16, #tpu.memory_space<vmem>>, vector<256x32xbf16>
    %cst = arith.constant dense<0.000000e+00> : vector<4x32xf32>
    %4 = tpu.matmul %2, %3, %cst {dimension_numbers = #tpu.dot_dimension_numbers<[1], [0], [0], [1], [0, 0, 1, 1], [], []>} : vector<4x256xbf16>, vector<256x32xbf16>, vector<4x32xf32> -> vector<4x32xf32>
    %c0_3 = arith.constant 0 : index
    %c0_4 = arith.constant 0 : index
    %5 = vector.load %arg4[%c0_3, %c0_4] : memref<4x32xf32, #tpu.memory_space<vmem>>, vector<4x32xf32>
    %6 = arith.addf %4, %5 : vector<4x32xf32>
    %7 = arith.index_cast %c0_i32 : i32 to index
    %c1 = arith.constant 1 : index
    %c0_5 = arith.constant 0 : index
    %8 = vector.load %arg5[%7, %c1, %c0_5] : memref<1x5x32xf32, #tpu.memory_space<vmem>>, vector<1x4x32xf32>
    %9 = vector.shape_cast %8 : vector<1x4x32xf32> to vector<4x32xf32>
    %10 = vector.shape_cast %6 : vector<4x32xf32> to vector<1x4x32xf32>
    tpu.vector_store %arg5[%7, %c1, %c0_5], %10 {strides = array<i32>} : memref<1x5x32xf32, #tpu.memory_space<vmem>>, vector<1x4x32xf32>,
    %c0_6 = arith.constant 0 : index
    %c0_7 = arith.constant 0 : index
    %11 = vector.load %arg3[%c0_6, %c0_7] : memref<1x32xf32, #tpu.memory_space<vmem>>, vector<1x32xf32>
    %12 = arith.index_cast %c0_i32 : i32 to index
    %c0_8 = arith.constant 0 : index
    %c0_9 = arith.constant 0 : index
    %13 = vector.load %arg5[%12, %c0_8, %c0_9] : memref<1x5x32xf32, #tpu.memory_space<vmem>>, vector<1x1x32xf32>
    %14 = vector.shape_cast %13 : vector<1x1x32xf32> to vector<1x32xf32>
    %15 = vector.shape_cast %11 : vector<1x32xf32> to vector<1x1x32xf32>
    tpu.vector_store %arg5[%12, %c0_8, %c0_9], %15 {strides = array<i32>} : memref<1x5x32xf32, #tpu.memory_space<vmem>>, vector<1x1x32xf32>,
    %c1_i32 = arith.constant 1 : i32
    return
  }
  func.func @transform_0(%arg0: i32) -> (i32, i32, i32) {
    %c0_i32 = arith.constant 0 : i32
    %c0_i32_0 = arith.constant 0 : i32
    %c0_i32_1 = arith.constant 0 : i32
    return %arg0, %c0_i32, %c0_i32_0 : i32, i32, i32
  }
  func.func @transform_1(%arg0: i32) -> (i32, i32) {
    %c0_i32 = arith.constant 0 : i32
    %c0_i32_0 = arith.constant 0 : i32
    %c0_i32_1 = arith.constant 0 : i32
    return %c0_i32, %c0_i32_0 : i32, i32
  }
  func.func @transform_2(%arg0: i32) -> (i32, i32) {
    %c0_i32 = arith.constant 0 : i32
    %c0_i32_0 = arith.constant 0 : i32
    %c0_i32_1 = arith.constant 0 : i32
    return %c0_i32, %c0_i32_0 : i32, i32
  }
  func.func @transform_3(%arg0: i32) -> (i32, i32) {
    %c0_i32 = arith.constant 0 : i32
    %c0_i32_0 = arith.constant 0 : i32
    %c0_i32_1 = arith.constant 0 : i32
    return %c0_i32, %c0_i32_0 : i32, i32
  }
  func.func @transform_4(%arg0: i32) -> (i32, i32, i32) {
    %c0_i32 = arith.constant 0 : i32
    %c0_i32_0 = arith.constant 0 : i32
    %c0_i32_1 = arith.constant 0 : i32
    return %arg0, %c0_i32, %c0_i32_0 : i32, i32, i32
  }
}

</mosaic_0001>

<bundles_post_ra>
// kernel: tpu_custom_call.1
= control target key start
LH: loop header
LB: loop body
LE: loop exit
PB: predicated region body
PF: predicated region fallthrough
CT: control target
= control target key end

     0   :  { %s543_s15 = smov 0   ;;  %s618_s0 = inlined_call_operand.vmem [shape: bf16[2,4,256], index: 0, kind: input, shape index: {}]   ;;  %s619_s1 = inlined_call_operand.vmem [shape: bf16[256,32], index: 1, kind: input, shape index: {}]   ;;  %s620_s2 = inlined_call_operand.vmem [shape: f32[1,32], index: 2, kind: input, shape index: {}]   ;;  %s621_s3 = inlined_call_operand.vmem [shape: f32[4,32], index: 3, kind: input, shape index: {}]   ;;  %s622_s4 = inlined_call_operand.vmem [shape: f32[2,5,32], index: 4, kind: output, shape index: {}]  }
   0x1 LB: > { %s436_s16 = sadd.s32 4294967295, %s516_s15   ;;  %p440_p0 = scmp.ge.s32.totalorder %s516_s15, 1  ;;  %s516_s15 = sphi %s543_s15, %s14_s15  }
   0x2   : > { %p162_p1 = scmp.lt.s32.totalorder %s516_s15, 3 }
   0x4   : > { %p163_p2 = pnand %p440_p0, %p162_p1 }
   0x5   : > { %v494_v0 = vld [vmem:[%s619_s1 + $0x40] sm:$0xff] (!%p163_p2)   ;;  %v496_v2 = vld [vmem:[%s619_s1 + $0x48] sm:$0xff] (!%p163_p2)   ;;  %p187_p3 = scmp.lt.s32.totalorder (!%p163_p2), %s436_s16, 1  ;;  %v498_v4 = vld [vmem:[%s619_s1 + $0x50] sm:$0xff] (!%p163_p2)   ;;  %vm381_vm0 = vcmask (!%p163_p2), 253952   ;;  %vm378_vm1 = vcmask (!%p163_p2), 257024  }
   0x6   : > { %166 = sbr.rel (%p163_p2) target bundleno = 256 (0x100), region = 36  ;;  %v495_v1 = vld [vmem:[%s619_s1] sm:$0xff] (!%p163_p2)   ;;  %464 = vmatprep.subr.bf16.mxu0 (!%p163_p2), %v494_v0  ;;  %v497_v3 = vld [vmem:[%s619_s1 + $0x8] sm:$0xff] (!%p163_p2)   ;;  %v499_v5 = vld [vmem:[%s619_s1 + $0x10] sm:$0xff] (!%p163_p2)  }
   0x7   : > { %465 = vmatpush3.bf16.msra.mxu0 (!%p163_p2), %v495_v1  ;;  %v500_v6 = vld [vmem:[%s619_s1 + $0x58] sm:$0xff] (!%p163_p2)   ;;  %v502_v8 = vld [vmem:[%s619_s1 + $0x60] sm:$0xff] (!%p163_p2)   ;;  %v504_v10 = vld [vmem:[%s619_s1 + $0x68] sm:$0xff] (!%p163_p2)  }
   0x8   : > { %466 = vmatprep.subr.bf16.mxu0 (!%p163_p2), %v496_v2  ;;  %v501_v7 = vld [vmem:[%s619_s1 + $0x18] sm:$0xff] (!%p163_p2)   ;;  %v503_v9 = vld [vmem:[%s619_s1 + $0x20] sm:$0xff] (!%p163_p2)   ;;  %v505_v14 = vld [vmem:[%s619_s1 + $0x28] sm:$0xff] (!%p163_p2)  }
   0x9   : > { %v380_v12 = vld [vmem:[%s620_s2] sm:$0x1] (!%p163_p2)  ;;  %v506_v15 = vld [vmem:[%s619_s1 + $0x70] sm:$0xff] (!%p163_p2)   ;;  %v508_v17 = vld [vmem:[%s619_s1 + $0x78] sm:$0xff] (!%p163_p2)  }
   0xa   : > { %v507_v16 = vld [vmem:[%s619_s1 + $0x30] sm:$0xff] (!%p163_p2)   ;;  %v509_v18 = vld [vmem:[%s619_s1 + $0x38] sm:$0xff] (!%p163_p2)   ;;  %v230_v20 = vld [vmem:[%s621_s3] sm:$0xf] (!%p163_p2) }
   0xb   : > { %467 = vmatpush3.bf16.msra.mxu0 (!%p163_p2), %v497_v3 }
   0xc   : > { %468 = vmatprep.subr.bf16.mxu0 (!%p163_p2), %v498_v4 }
   0xd   : > { %s624_s16 = smov (!%p187_p3, %s436_s16), 1 }
   0xe   : > { %s463_s5 = sshll.u32 %s624_s16, 2  ;;  %s443_s8 = sshll.u32 %s624_s16, 3 }
   0xf   : > { %469 = vmatpush3.bf16.msra.mxu0 %v499_v5  ;;  %s191_s13 = scalar_lea.vmem %s618_s0, %s463_s5  ;;  %s587_s20 = scalar_lea.vmem %s622_s4, %s443_s8 }
  0x10   : > { %470 = vmatprep.subr.bf16.mxu0 %v500_v6  ;;  %v444_v11 = vld.sshfl [vmem:[%s191_s13] sm:$0x33 pattern:$0x76325410]  ;;  %382 = vst.msk [vmem:[%s587_s20] sm:$0x1] %vm381_vm0, %v380_v12 }
  0x11   : > { %v239_v13 = vcombine.high %v444_v11, %v444_v11 }
  0x13   : > { %471 = vmatpush3.bf16.msra.mxu0 %v501_v7  ;;  %370 = vmatprep.mubr.bf16.mxu0 %v239_v13 }
  0x14   : > { %472 = vmatprep.subr.bf16.mxu0 %v502_v8 }
  0x17   : > { %473 = vmatpush3.bf16.msra.mxu0 %v503_v9 }
  0x18   : > { %474 = vmatprep.subr.bf16.mxu0 %v504_v10 }
  0x1b   : > { %475 = vmatpush3.bf16.msra.mxu0 %v505_v14 }
  0x1c   : > { %476 = vmatprep.subr.bf16.mxu0 %v506_v15 }
  0x1f   : > { %477 = vmatpush3.bf16.msra.mxu0 %v507_v16 }
  0x20   : > { %478 = vmatprep.subr.bf16.mxu0 %v508_v17 }
  0x23   : > { %479 = vmatpush3.bf16.msra.mxu0 %v509_v18 }
  0x26   : > { %371 = vmatmul.mubr.bf16.vlgmr.msra.gmra.mrb[0].mxu0 %v444_v11 }
  0xf9   : > { %v480_v19 = vpop.f32.mrb[0].mxu0 }
  0xfa   : > { %v481_v21 = vpop.f32.mrb[1].mxu0 }
  0xfb   : > { %v482_v22 = vadd.f32 %v481_v21, %v480_v19  ;;  %v483_v23 = vpop.f32.mrb[2].mxu0 }
  0xfc   : > { %v484_v24 = vpop.f32.mrb[3].mxu0 }
  0xfd   : > { %v373_v25 = vadd.f32 %v482_v22, %v230_v20 }
  0xff   : > { %379 = vst.msk [vmem:[%s587_s20 + $0x1] sm:$0xf] %vm378_vm1, %v373_v25 }
 0x100 PF: > { %s14_s15 = sadd.s32 1, %s516_s15  }
 0x101   : > { %p11_p4 = scmp.ge.s32.totalorder %s14_s15, 4  }
 0x103   :  { %13 = sbr.rel (!%p11_p4) target bundleno = 1 (0x1), region = 66 }

</bundles_post_ra>
